<compile_context>
chip_gen: v6e
topology: v6e:2x2x1
jax: 0.10.0
libtpu: 0.0.40
codegen_flags: <defaults>
</compile_context>

<pallas_src>
import functools

import jax
import jax.numpy as jnp
from jax.experimental import pallas as pl
from jax.experimental.pallas import tpu as pltpu

WIDTH = 36          # Linear out_features
IN_FEATURES = 31    # Linear in_features
PADDING = 8         # F.pad amount on each side of the last three dims

_TM_CAP = 2048      # max tokens per grid tile (see VMEM accounting below)
_CHUNK = 256        # tokens per in-kernel sub-tile (keeps the f32 acc in vregs)
_MIN_GRID_STEPS = 4 # keep both v7x TensorCores busy even for tiny batches


def _cdiv(a, b):
    return -(-a // b)


def _choose_tm(B, T):
    """Token-tile size: as large as possible (big, ~86%-of-roofline DMAs), but
    always enough 'parallel' grid steps that v7x's second TensorCore has work."""
    tm = min(T, _TM_CAP)
    if B * _cdiv(T, tm) < _MIN_GRID_STEPS:
        per_batch = _cdiv(_MIN_GRID_STEPS, B)
        tm_split = max(128, 128 * _cdiv(_cdiv(T, per_batch), 128))
        tm = min(tm, tm_split)
    return max(1, min(tm, T))


def _linear_t_kernel(x_ref, w_ref, b_ref, o_ref):
    """Fused Linear + channels-first transpose for one (batch, token-tile).

    x_ref: (1, TM, 31)   w_ref: (31, 36)   b_ref: (1, 36)   o_ref: (1, 36, TM)

    The TM-token tile is processed in 256-token chunks so each chunk's f32
    accumulator stays register-resident (instead of staging a (TM, 36)
    temporary through VMEM) and the MXU dot, XLU transpose and vst overlap.
    """
    tm = x_ref.shape[1]
    w = w_ref[...]          # (31, 36): ~4 vregs, resident across chunks
    bias = b_ref[...]       # (1, 36): sublane-broadcast in the add
    for start in range(0, tm, _CHUNK):        # static, fully unrolled
        sz = min(_CHUNK, tm - start)
        xc = x_ref[0, pl.ds(start, sz), :]                         # (sz, 31)
        acc = jnp.dot(xc, w, preferred_element_type=jnp.float32)   # MXU
        acc = (acc + bias).astype(o_ref.dtype)   # cast BEFORE the transpose
        o_ref[0, :, pl.ds(start, sz)] = acc.T    # (36, sz) lane-dense store


@functools.partial(jax.jit, static_argnames=("interpret",))
def branch1_forward(x, w, b, *, interpret=False):
    """x: (B, D1, D2, D3, 31) f32 -> (B, 36, D1+16, D2+16, D3+16) f32."""
    B, D1, D2, D3, K = x.shape
    assert K == IN_FEATURES
    T = D1 * D2 * D3                  # tokens per batch element

    tm = _choose_tm(B, T)
    grid = (B, _cdiv(T, tm))          # ragged tail handled by Pallas masking

    x_tok = x.reshape(B, T, K)        # free row-major merge of the spatial dims
    b2d = b.reshape(1, WIDTH)

    # VMEM accounting: the (1, tm, 31) x block is lane-padded to 128 lanes ->
    # tm*128*4 B (1 MiB at tm=2048), double-buffered -> 2 MiB; the (1, 36, tm)
    # out block is ~(40 x tm x 4 B) = 320 KiB x 2 buffers; weight/bias/chunk
    # accumulators are negligible.  ~4-5 MiB total: well under the scoped
    # budget on v5e/v6e (16/32 MiB) and v7x (32 MiB scoped / 64 MiB physical).
    y = pl.pallas_call(
        _linear_t_kernel,
        out_shape=jax.ShapeDtypeStruct((B, WIDTH, T), x.dtype),
        grid_spec=pltpu.PrefetchScalarGridSpec(
            num_scalar_prefetch=0,
            grid=grid,
            in_specs=[
                pl.BlockSpec((1, tm, K), lambda bi, ti: (bi, ti, 0)),   # x tile
                pl.BlockSpec((K, WIDTH), lambda bi, ti: (0, 0)),        # weight
                pl.BlockSpec((1, WIDTH), lambda bi, ti: (0, 0)),        # bias
            ],
            out_specs=pl.BlockSpec((1, WIDTH, tm), lambda bi, ti: (bi, 0, ti)),
        ),
        compiler_params=pltpu.CompilerParams(
            dimension_semantics=("parallel", "parallel"),
            vmem_limit_bytes=32 * 1024 * 1024,
        ),
        cost_estimate=pl.CostEstimate(
            flops=2 * B * T * K * WIDTH,
            bytes_accessed=4 * (B * T * K + B * T * WIDTH + K * WIDTH + WIDTH),
            transcendentals=0,
        ),
        interpret=interpret,
    )(x_tok, w, b2d)

    # Free reshape back to channels-first 5-D; the permute already happened
    # inside the kernel (lane-dense (36, tm) stores).
    y = y.reshape(B, WIDTH, D1, D2, D3)

    # F.pad(x, [p]*6) zero-pads the last three dims.  Kept as a single XLA pad
    # fusion (padding-dominated shapes); see TODO(synk) in the header for the
    # interior-dominated fused-pad variant.
    p = PADDING
    return jnp.pad(y, ((0, 0), (0, 0), (p, p), (p, p), (p, p)))


def init_params(key):
    """Deterministic init matching nn.Linear(31, 36) default U[-1/sqrt(fan_in), +]."""
    kw, kb = jax.random.split(key)
    bound = 1.0 / jnp.sqrt(float(IN_FEATURES))
    # PyTorch stores weight as (out, in); keep (in, out) for the matmul.
    w = jax.random.uniform(kw, (IN_FEATURES, WIDTH), jnp.float32, -bound, bound)
    b = jax.random.uniform(kb, (WIDTH,), jnp.float32, -bound, bound)
    return w, b


def _reference(x, w, b):
    p = PADDING
    return jnp.pad((x @ w + b).transpose(0, 4, 1, 2, 3),
                   ((0, 0), (0, 0), (p, p), (p, p), (p, p)))


if __name__ == "__main__":
    key = jax.random.PRNGKey(0)
    kx, kp, kx2, kx3 = jax.random.split(key, 4)
    w, b = init_params(kp)

    # 1) Demo shape (B, 8, 8, 8, 31): T=512 -> split to tm=256, grid (2, 2).
    B, D1, D2, D3 = 2, 8, 8, 8
    x = jax.random.normal(kx, (B, D1, D2, D3, IN_FEATURES), jnp.float32)
    out = branch1_forward(x, w, b)
    jax.block_until_ready(out)
    assert out.shape == (B, WIDTH, D1 + 2 * PADDING, D2 + 2 * PADDING, D3 + 2 * PADDING)
    assert jnp.allclose(out, _reference(x, w, b), atol=1e-5, rtol=1e-5)

    # 2) Odd shape (grid-level ragged tail): T=343, tm=256 -> masked last block.
    x_odd = jax.random.normal(kx2, (2, 7, 7, 7, IN_FEATURES), jnp.float32)
    out_odd = branch1_forward(x_odd, w, b)
    jax.block_until_ready(out_odd)
    assert jnp.allclose(out_odd, _reference(x_odd, w, b), atol=1e-5, rtol=1e-5)

    # 3) In-kernel ragged-chunk path (B=4 -> no split, tm = T = 343 -> chunks
    #    of 256 + 87), verified in interpret mode to lock in the indexing.
    x_rag = jax.random.normal(kx3, (4, 7, 7, 7, IN_FEATURES), jnp.float32)
    out_rag = branch1_forward(x_rag, w, b, interpret=True)
    jax.block_until_ready(out_rag)
    assert jnp.allclose(out_rag, _reference(x_rag, w, b), atol=1e-5, rtol=1e-5)

    print("KERNEL_OK")
</pallas_src>

<mosaic_0001>
module attributes {stable_mosaic.version = 11 : i64} {
  func.func @_linear_t_kernel(%arg0: i32, %arg1: i32, %arg2: memref<1x256x31xf32, #tpu.memory_space<vmem>>, %arg3: memref<31x36xf32, #tpu.memory_space<vmem>>, %arg4: memref<1x36xf32, #tpu.memory_space<vmem>>, %arg5: memref<1x36x256xf32, #tpu.memory_space<vmem>>) attributes {dimension_semantics = [#tpu.dimension_semantics<parallel>, #tpu.dimension_semantics<parallel>], iteration_bounds = array<i64: 2, 2>, scalar_prefetch = 0 : i64, scratch_operands = 0 : i64, tpu.core_type = #tpu.core_type<tc>, window_params = [{transform_indices = @transform_0, window_bounds = array<i64: 1, 256, 31>}, {pipeline_mode = #tpu.pipeline_mode<synchronous>, transform_indices = @transform_1, window_bounds = array<i64: 31, 36>}, {pipeline_mode = #tpu.pipeline_mode<synchronous>, transform_indices = @transform_2, window_bounds = array<i64: 1, 36>}, {transform_indices = @transform_3, window_bounds = array<i64: 1, 36, 256>}]} {
    %c0 = arith.constant 0 : index
    %c0_0 = arith.constant 0 : index
    %0 = vector.load %arg3[%c0, %c0_0] : memref<31x36xf32, #tpu.memory_space<vmem>>, vector<31x36xf32>
    %c0_1 = arith.constant 0 : index
    %c0_2 = arith.constant 0 : index
    %1 = vector.load %arg4[%c0_1, %c0_2] : memref<1x36xf32, #tpu.memory_space<vmem>>, vector<1x36xf32>
    %c0_3 = arith.constant 0 : index
    %c0_4 = arith.constant 0 : index
    %c0_5 = arith.constant 0 : index
    %2 = vector.load %arg2[%c0_3, %c0_4, %c0_5] : memref<1x256x31xf32, #tpu.memory_space<vmem>>, vector<1x256x31xf32>
    %3 = vector.shape_cast %2 : vector<1x256x31xf32> to vector<256x31xf32>
    %cst = arith.constant dense<0.000000e+00> : vector<256x36xf32>
    %4 = tpu.matmul %3, %0, %cst {dimension_numbers = #tpu.dot_dimension_numbers<[1], [0], [0], [1], [0, 0, 1, 1], [], []>} : vector<256x31xf32>, vector<31x36xf32>, vector<256x36xf32> -> vector<256x36xf32>
    %5 = vector.broadcast %1 : vector<1x36xf32> to vector<256x36xf32>
    %6 = arith.addf %4, %5 : vector<256x36xf32>
    %7 = tpu.transpose %6, [1, 0] : vector<256x36xf32> -> vector<36x256xf32>
    %c0_6 = arith.constant 0 : index
    %c0_7 = arith.constant 0 : index
    %c0_8 = arith.constant 0 : index
    %8 = vector.load %arg5[%c0_6, %c0_7, %c0_8] : memref<1x36x256xf32, #tpu.memory_space<vmem>>, vector<1x36x256xf32>
    %9 = vector.shape_cast %8 : vector<1x36x256xf32> to vector<36x256xf32>
    %10 = vector.shape_cast %7 : vector<36x256xf32> to vector<1x36x256xf32>
    tpu.vector_store %arg5[%c0_6, %c0_7, %c0_8], %10 {strides = array<i32>} : memref<1x36x256xf32, #tpu.memory_space<vmem>>, vector<1x36x256xf32>,
    return
  }
  func.func @transform_0(%arg0: i32, %arg1: i32) -> (i32, i32, i32) {
    %c0_i32 = arith.constant 0 : i32
    %c0_i32_0 = arith.constant 0 : i32
    return %arg0, %arg1, %c0_i32 : i32, i32, i32
  }
  func.func @transform_1(%arg0: i32, %arg1: i32) -> (i32, i32) {
    %c0_i32 = arith.constant 0 : i32
    %c0_i32_0 = arith.constant 0 : i32
    %c0_i32_1 = arith.constant 0 : i32
    return %c0_i32, %c0_i32_0 : i32, i32
  }
  func.func @transform_2(%arg0: i32, %arg1: i32) -> (i32, i32) {
    %c0_i32 = arith.constant 0 : i32
    %c0_i32_0 = arith.constant 0 : i32
    %c0_i32_1 = arith.constant 0 : i32
    return %c0_i32, %c0_i32_0 : i32, i32
  }
  func.func @transform_3(%arg0: i32, %arg1: i32) -> (i32, i32, i32) {
    %c0_i32 = arith.constant 0 : i32
    %c0_i32_0 = arith.constant 0 : i32
    return %arg0, %c0_i32, %arg1 : i32, i32, i32
  }
}

</mosaic_0001>

<bundles_post_ra>
// kernel: branch1_forward.1
= control target key start
LH: loop header
LB: loop body
LE: loop exit
PB: predicated region body
PF: predicated region fallthrough
CT: control target
= control target key end

     0   :  { %s1553_s0 = inlined_call_operand.hbm [shape: f32[2,512,31], index: 0, kind: input, shape index: {}]   ;;  %s1554_s1 = inlined_call_operand.hbm [shape: f32[31,36], index: 1, kind: input, shape index: {}]   ;;  %s1555_s2 = inlined_call_operand.hbm [shape: f32[1,36], index: 2, kind: input, shape index: {}]   ;;  %s1556_s3 = inlined_call_operand.vmem [shape: f32[2,36,512], index: 3, kind: output, shape index: {}]  }
   0x1   :  { %1560 = sst [smem:[#allocation11_spill]] %s1554_s1 }
   0x2   :  { %1561 = sst [smem:[#allocation12_spill]] %s1555_s2 }
   0x3   :  { %8 = vsyncpa [#allocation3], 0 }
   0x4   :  { %10 = vsyncpa [#allocation3 + $0x1], 0 }
   0x5   :  { %11 = vsyncpa [#allocation5], 0  ;;  %s1245_s12 = smov 0   ;;  %s1247_s13 = smov 0  }
   0x6   :  { %s1249_s14 = smov 0   ;;  %s1251_s15 = smov 0  }
   0x7   :  { %s1253_s16 = smov 0   ;;  %s1255_s17 = smov 0  }
   0x8   :  { %s1257_s18 = smov 0   ;;  %s1259_s19 = smov 0  }
   0x9 LB: > { %s820_s20 = sadd.s32 4294967295, %s1218_s19   ;;  %p51_p0 = scmp.ne.s32.totalorder %s1194_s13, %s1190_s12  ;;  %s1218_s19 = sphi %s1259_s19, %s17_s19   ;;  %s1214_s18 = sphi %s1257_s18, %s1582_s18   ;;  %s1210_s17 = sphi %s1255_s17, %s1581_s17   ;;  %s1206_s16 = sphi %s1253_s16, %s1580_s16   ;;  %s1202_s15 = sphi %s1251_s15, %s1579_s15   ;;  %s1198_s14 = sphi %s1249_s14, %s1578_s14   ;;  %s1194_s13 = sphi %s1247_s13, %s1577_s13   ;;  %s1190_s12 = sphi %s1245_s12, %s1576_s12  }
   0xa   : > { %p1285_p1 = scmp.eq.s32.totalorder %s820_s20, 0  ;;  %p1289_p2 = scmp.eq.s32.totalorder %s820_s20, 3 }
   0xb   : > { %p822_p3 = scmp.ge.s32.totalorder %s1218_s19, 1  ;;  %p132_p4 = scmp.lt.s32.totalorder %s1218_s19, 5 }
   0xc   : > { %p1297_p5 = por %p1285_p1, %p51_p0  ;;  %s1220_s25 = smov [#allocation4]  }
   0xd   : > { %p1301_p6 = pnand %p822_p3, %p132_p4  ;;  %s144_s26 = sshll.u32 %s1220_s25, 4  ;;  %s145_s26 = int_to_ptr.vmem [resolvable:$true] %s144_s26 }
   0xe   : > { %s1221_s28 = smov [#allocation6]   ;;  %s1079_s30 = scalar_lea.vmem %s145_s26, 512 }
   0xf   : > { %p984_p7 = pneg %p1301_p6  ;;  %s158_s29 = sshll.u32 %s1221_s28, 4  ;;  %s159_s29 = int_to_ptr.vmem [resolvable:$true] %s158_s29 }
  0x10   : > { %p1080_p10 = scmp.ne.s32.totalorder %s145_s26, %s1079_s30  ;;  %p1087_p13 = scmp.lt.s32.totalorder %s145_s26, %s145_s26 }
  0x11   : > { %p1309_p8 = pnand %p984_p7, %p1285_p1  ;;  %p1088_p0 = scmp.lt.s32.totalorder %s1079_s30, %s1079_s30 }
  0x13   : > { %p1070_p9 = pneg %p1309_p8  ;;  %p1089_p3 = por %p1088_p0, %p1087_p13 }
  0x15   : > { %p1082_p11 = pnand %p1080_p10, %p1070_p9 }
  0x17   : > { %p1083_p12 = pneg %p1082_p11 }
  0x19   : > { %p1090_p4 = pnand %p1089_p3, %p1083_p12 }
  0x1b   : > { %1093 = shalt.err (!%p1090_p4)
}
  0x1c   : > { %s1557_s4 = smov 128   ;;  %s1558_s5 = smov 8  }
  0x1d   : > { %s1567_s1 = sld [smem:[#allocation11_spill]]  ;;  %s1105_s8 = scalar_lea.vmem %s159_s29, 16 }
  0x1e   : > { %p1106_p7 = scmp.ne.s32.totalorder %s159_s29, %s1105_s8  ;;  %s1112_s9 = scalar_lea.vmem %s159_s29, 32 }
  0x1f   : > { %p1113_p12 = scmp.lt.s32.totalorder %s159_s29, %s159_s29  ;;  %p1114_p13 = scmp.lt.s32.totalorder %s1112_s9, %s1105_s8 }
  0x20   : > { %p1108_p10 = pnand %p1106_p7, %p1070_p9 }
  0x21   : > { %p1115_p0 = por %p1114_p13, %p1113_p12 }
  0x22   : > { %p1109_p11 = pneg %p1108_p10 }
  0x23   : > { %987 = dma.hbm_to_vmem [thread:$0]  (!%p1309_p8), %s1567_s1, 512, %s145_s26, [#allocation5], %s1557_s4, %s1557_s4, %s1558_s5  }
  0x24   : > { %p1116_p3 = pnand %p1115_p0, %p1109_p11 }
  0x26   : > { %1119 = shalt.err (!%p1116_p3)
}
  0x27   : > { %s1568_s2 = sld [smem:[#allocation12_spill]]  ;;  %s26_s12 = sadd.s32 1, %s1210_s17 }
  0x28   : > { %p27_p9 = scmp.ge.s32.totalorder %s26_s12, 2  ;;  %s29_s20 = sadd.s32 1, %s1214_s18 }
  0x29   : > { %s38_s25 = sadd.s32 1, %s1198_s14  ;;  %p45_p4 = scmp.ne.s32.totalorder %s1198_s14, %s1194_s13 }
  0x2a   : > { %s1584_s12 = smov (%p27_p9, %s26_s12), 0  ;;  %s1586_s20 = smov (!%p27_p9, %s29_s20), %s1214_s18 }
  0x2b   : > { %1569 = sst [smem:[#allocation10_spill]] %s1584_s12  ;;  %s34_s26 = ssub.s32 %s1210_s17, %s1584_s12 }
  0x2c   : > { %p46_p7 = scmp.eq.s32.totalorder %s1218_s19, 0  ;;  %p31_p10 = scmp.ge.s32.totalorder %s1586_s20, 2 }
  0x2d   : > { %990 = dma.hbm_to_vmem [thread:$0]  (!%p1309_p8), %s1568_s2, 16, %s159_s29, [#allocation5]  }
  0x2e   : > { %p1347_p11 = por %p1289_p2, %p45_p4  ;;  %p1351_p8 = por %p46_p7, %p45_p4 }
  0x2f   : > { %p997_p12 = scmp.lt.s32.totalorder %s1218_s19, 4  ;;  %s1588_s20 = smov (%p31_p10, %s1586_s20), 0 }
  0x30   : > { %s169_s29 = sand.u32 1, %s1198_s14   ;;  %s827_s30 = sshll.u32 %s1210_s17, 5 }
  0x31   : > { %s33_s6 = ssub.s32 %s1214_s18, %s1588_s20  ;;  %s826_s8 = sshll.u32 %s169_s29, 8 }
  0x32   : > { %s35_s7 = sor.u32 %s34_s26, %s33_s6  ;;  %s828_s22 = sshll.u32 %s1214_s18, 6 }
  0x33   : > { %p36_p13 = scmp.eq.s32.totalorder %s35_s7, 0  ;;  %s173_s9 = scalar_lea.vmem [#allocation2], %s826_s8 }
  0x34   : > { %s182_s10 = sshll.u32 %s173_s9, 4  ;;  %s179_s4 = sadd.s32 %s828_s22, %s827_s30  ;;  %s183_s10 = int_to_ptr.vmem [resolvable:$true] %s182_s10 }
  0x35   : > { %s1364_s11 = scalar_select %p36_p13, %s1198_s14, %s38_s25  }
  0x36   : > { %s829_s5 = sshll.u32 %s179_s4, 7  ;;  %p1370_p2 = pnand %p997_p12, %p1351_p8 }
  0x37   : > { %s181_s26 = scalar_lea.hbm %s1553_s0, %s829_s5  ;;  %s170_s6 = scalar_lea.sflag [#allocation3], %s169_s29 }
  0x38   : > { %p1122_p0 = pneg %p1370_p2  ;;  %s1133_s7 = scalar_lea.vmem %s183_s10, 4096 }
  0x39   : > { %p1134_p3 = scmp.ne.s32.totalorder %s183_s10, %s1133_s7  ;;  %s1224_s25 = smov [#allocation2]  }
  0x3a   : > { %s1138_s4 = sshll.u32 %s1224_s25, 4  ;;  %s1139_s4 = int_to_ptr.vmem [resolvable:$false] %s1138_s4 }
  0x3b   : > { %p1136_p9 = pnand %p1134_p3, %p1122_p0  ;;  %s1140_s28 = scalar_lea.vmem %s1139_s4, 8192 }
  0x3c   : > { %p1141_p7 = scmp.lt.s32.totalorder %s183_s10, %s1139_s4  ;;  %p1142_p10 = scmp.lt.s32.totalorder %s1140_s28, %s1133_s7 }
  0x3d   : > { %p1137_p4 = pneg %p1136_p9 }
  0x3e   : > { %p1143_p8 = por %p1142_p10, %p1141_p7 }
  0x40   : > { %p1144_p12 = pnand %p1143_p8, %p1137_p4 }
  0x42   : > { %1147 = shalt.err (!%p1144_p12)
}
  0x43   : > { %s1573_s2 = smov 8   ;;  %s1574_s5 = smov 128  }
  0x44   : > { %994 = dma.hbm_to_vmem [thread:$0]  (!%p1370_p2), %s181_s26, 4096, %s183_s10, %s170_s6, %s1574_s5, %s1574_s5, %s1573_s2  }
  0x45   : > { %194 = sbr.rel (%p1301_p6) target bundleno = 434 (0x1b2), region = 32  ;;  %s1387_s12 = sand.u32 (!%p1301_p6), 1, %s1194_s13  }
  0x46   : > { %s831_s29 = sshll.u32 (!%p1301_p6), %s1387_s12, 8  ;;  %s197_s30 = scalar_lea.sflag (!%p1301_p6), [#allocation3], %s1387_s12 }
  0x47   : > { %s1391_s8 = scalar_lea.vmem (!%p1301_p6), [#allocation2], %s831_s29 }
  0x4a   : > { %1181 = dma.done.wait (%p1297_p5), %s197_s30, 4096  }
  0x4b   : > { %1183 = vsyncadd (%p1297_p5), %s197_s30, 4294963200 }
  0x4c   : > { %1185 = dma.done.wait (%p1285_p1), [#allocation5], 528  }
  0x4d   : > { %1187 = vsyncadd (%p1285_p1), [#allocation5], 4294966768  ;;  %vm372_vm0 = vcmask 1046528   ;;  %v235_v0 = vld [vmem:[#allocation4 + $0x18] sm:$0x7f]  ;;  %v234_v1 = vld [vmem:[#allocation4 + $0x10] sm:$0xff] }
  0x4e   : > { %908 = vmatprep.subr.msk.mxu0 %vm372_vm0, %v235_v0  ;;  %964 = vmatprep.subr.msk.mxu1 %vm372_vm0, %v235_v0  ;;  %v233_v2 = vld [vmem:[#allocation4 + $0x8] sm:$0xff]  ;;  %v232_v3 = vld [vmem:[#allocation4] sm:$0xff]  ;;  %vm275_vm1 = vcmask 252928   ;;  %v239_v8 = vld [vmem:[%s1391_s8 + $0x10] sm:$0xff]  ;;  %s972_s1 = smul.u32 80, %s1387_s12  ;;  %s868_s23 = sshll.u32 (%p1347_p11), %s1202_s15, 1 }
  0x4f   : > { %909 = vmatpush3.msk.msra.mxu0 %vm372_vm0, %v235_v0  ;;  %968 = vmatpush3.msk.msra.mxu1 %vm372_vm0, %v235_v0  ;;  %v237_v4 = vld [vmem:[%s1391_s8] sm:$0xff]  ;;  %v238_v6 = vld [vmem:[%s1391_s8 + $0x8] sm:$0xff]  ;;  %v255_v9 = vld [vmem:[%s1391_s8 + $0x90] sm:$0xff]  ;;  %s973_s24 = smul.u32 (%p1347_p11), 20, %s1206_s16 }
  0x50   : > { %910 = vmatprep.subr.mxu0 %v234_v1  ;;  %965 = vmatprep.subr.mxu1 %v234_v1  ;;  %v253_v5 = vld [vmem:[%s1391_s8 + $0x80] sm:$0xff]  ;;  %v254_v7 = vld [vmem:[%s1391_s8 + $0x88] sm:$0xff]  ;;  %v240_v10 = vld [vmem:[%s1391_s8 + $0x18] sm:$0xff]  ;;  %s1500_s21 = scalar_lea.vmem [#allocation7], %s972_s1 }
  0x51   : > { %911 = vmatpush3.msra.mxu0 %v234_v1  ;;  %969 = vmatpush3.msra.mxu1 %v234_v1  ;;  %v256_v11 = vld [vmem:[%s1391_s8 + $0x98] sm:$0xff]  ;;  %v241_v12 = vld [vmem:[%s1391_s8 + $0x20] sm:$0xff]  ;;  %v242_v14 = vld [vmem:[%s1391_s8 + $0x28] sm:$0xff]  ;;  %s684_s27 = sadd.s32 (%p1347_p11), %s973_s24, %s868_s23 }
  0x52   : > { %912 = vmatprep.subr.mxu0 %v233_v2  ;;  %966 = vmatprep.subr.mxu1 %v233_v2  ;;  %v257_v13 = vld [vmem:[%s1391_s8 + $0xa0] sm:$0xff]  ;;  %v258_v15 = vld [vmem:[%s1391_s8 + $0xa8] sm:$0xff]  ;;  %v243_v16 = vld [vmem:[%s1391_s8 + $0x30] sm:$0xff]  ;;  %s869_s22 = sshll.u32 (%p1347_p11), %s684_s27, 3 }
  0x53   : > { %913 = vmatpush3.msra.mxu0 %v233_v2  ;;  %970 = vmatpush3.msra.mxu1 %v233_v2  ;;  %v259_v17 = vld [vmem:[%s1391_s8 + $0xb0] sm:$0xff]  ;;  %v244_v18 = vld [vmem:[%s1391_s8 + $0x38] sm:$0xff]  ;;  %v245_v20 = vld [vmem:[%s1391_s8 + $0x40] sm:$0xff]  ;;  %s686_s26 = scalar_lea.vmem (%p1347_p11), %s1556_s3, %s869_s22 }
  0x54   : > { %914 = vmatprep.subr.mxu0 %v232_v3  ;;  %967 = vmatprep.subr.mxu1 %v232_v3  ;;  %v260_v19 = vld [vmem:[%s1391_s8 + $0xb8] sm:$0xff]  ;;  %v261_v21 = vld [vmem:[%s1391_s8 + $0xc0] sm:$0xff]  ;;  %v246_v22 = vld [vmem:[%s1391_s8 + $0x48] sm:$0xff] }
  0x55   : > { %915 = vmatpush3.msra.mxu0 %v232_v3  ;;  %971 = vmatpush3.msra.mxu1 %v232_v3  ;;  %v262_v23 = vld [vmem:[%s1391_s8 + $0xc8] sm:$0xff]  ;;  %v247_v24 = vld [vmem:[%s1391_s8 + $0x50] sm:$0xff]  ;;  %v248_v26 = vld [vmem:[%s1391_s8 + $0x58] sm:$0xff] }
  0x56   : > { %916 = vmatprep.mubr.msk.f32.mxu0 %vm275_vm1, %v237_v4  ;;  %940 = vmatprep.mubr.msk.f32.mxu1 %vm275_vm1, %v253_v5  ;;  %v263_v25 = vld [vmem:[%s1391_s8 + $0xd0] sm:$0xff]  ;;  %v264_v27 = vld [vmem:[%s1391_s8 + $0xd8] sm:$0xff]  ;;  %v249_v28 = vld [vmem:[%s1391_s8 + $0x60] sm:$0xff] }
  0x57   : > { %917 = vmatmul.mubr.msk.f32.vlgmr.msra.gmra.mxu0 %vm275_vm1, %v238_v6  ;;  %941 = vmatmul.mubr.msk.f32.vlgmr.msra.gmra.mxu1 %vm275_vm1, %v254_v7  ;;  %v265_v29 = vld [vmem:[%s1391_s8 + $0xe0] sm:$0xff]  ;;  %v250_v30 = vld [vmem:[%s1391_s8 + $0x68] sm:$0xff]  ;;  %v251_v32 = vld [vmem:[%s1391_s8 + $0x70] sm:$0xff] }
  0x58   : > { %919 = vmatprep.mubr.msk.f32.mxu0 %vm275_vm1, %v239_v8  ;;  %943 = vmatprep.mubr.msk.f32.mxu1 %vm275_vm1, %v255_v9  ;;  %v266_v31 = vld [vmem:[%s1391_s8 + $0xe8] sm:$0xff]  ;;  %v267_v33 = vld [vmem:[%s1391_s8 + $0xf0] sm:$0xff]  ;;  %v252_v34 = vld [vmem:[%s1391_s8 + $0x78] sm:$0xff] }
  0x59   : > { %v268_v35 = vld [vmem:[%s1391_s8 + $0xf8] sm:$0xff]  ;;  %v1465_v38 = vld [vmem:[#allocation6] ss:$0 sm:$0xff] }
  0x5b   : > { %920 = vmatmul.mubr.msk.f32.gmra.mxu0 %vm275_vm1, %v240_v10  ;;  %944 = vmatmul.mubr.msk.f32.gmra.mxu1 %vm275_vm1, %v256_v11 }
  0x5c   : > { %922 = vmatprep.mubr.msk.f32.mxu0 %vm275_vm1, %v241_v12  ;;  %946 = vmatprep.mubr.msk.f32.mxu1 %vm275_vm1, %v257_v13 }
  0x5f   : > { %923 = vmatmul.mubr.msk.f32.gmra.mxu0 %vm275_vm1, %v242_v14  ;;  %947 = vmatmul.mubr.msk.f32.gmra.mxu1 %vm275_vm1, %v258_v15 }
  0x60   : > { %925 = vmatprep.mubr.msk.f32.mxu0 %vm275_vm1, %v243_v16  ;;  %949 = vmatprep.mubr.msk.f32.mxu1 %vm275_vm1, %v259_v17 }
  0x63   : > { %926 = vmatmul.mubr.msk.f32.gmra.mxu0 %vm275_vm1, %v244_v18  ;;  %950 = vmatmul.mubr.msk.f32.gmra.mxu1 %vm275_vm1, %v260_v19 }
  0x64   : > { %928 = vmatprep.mubr.msk.f32.mxu0 %vm275_vm1, %v245_v20  ;;  %952 = vmatprep.mubr.msk.f32.mxu1 %vm275_vm1, %v261_v21 }
  0x67   : > { %929 = vmatmul.mubr.msk.f32.gmra.mxu0 %vm275_vm1, %v246_v22  ;;  %953 = vmatmul.mubr.msk.f32.gmra.mxu1 %vm275_vm1, %v262_v23 }
  0x68   : > { %931 = vmatprep.mubr.msk.f32.mxu0 %vm275_vm1, %v247_v24  ;;  %955 = vmatprep.mubr.msk.f32.mxu1 %vm275_vm1, %v263_v25 }
  0x6b   : > { %932 = vmatmul.mubr.msk.f32.gmra.mxu0 %vm275_vm1, %v248_v26  ;;  %956 = vmatmul.mubr.msk.f32.gmra.mxu1 %vm275_vm1, %v264_v27 }
  0x6c   : > { %934 = vmatprep.mubr.msk.f32.mxu0 %vm275_vm1, %v249_v28  ;;  %958 = vmatprep.mubr.msk.f32.mxu1 %vm275_vm1, %v265_v29 }
  0x6f   : > { %935 = vmatmul.mubr.msk.f32.gmra.mxu0 %vm275_vm1, %v250_v30  ;;  %959 = vmatmul.mubr.msk.f32.gmra.mxu1 %vm275_vm1, %v266_v31 }
  0x70   : > { %937 = vmatprep.mubr.msk.f32.mxu0 %vm275_vm1, %v251_v32  ;;  %961 = vmatprep.mubr.msk.f32.mxu1 %vm275_vm1, %v267_v33 }
  0x73   : > { %938 = vmatmul.mubr.msk.f32.gmra.mxu0 %vm275_vm1, %v252_v34  ;;  %962 = vmatmul.mubr.msk.f32.gmra.mxu1 %vm275_vm1, %v268_v35 }
 0x117   : > { %v918_v36 = vpop.f32.mrf.mxu0  ;;  %v942_v37 = vpop.f32.mrf.mxu1 }
 0x118   : > { %v448_v45 = vadd.f32 %v918_v36, %v1465_v38  ;;  %v528_v46 = vadd.f32 %v942_v37, %v1465_v38 }
 0x119   : > { %v442_v39 = vpop.f32.mrf.mxu0  ;;  %v522_v40 = vpop.f32.mrf.mxu1 }
 0x11a   : > { %v523_v41 = vadd.f32 %v1465_v38, %v522_v40  ;;  %v443_v42 = vadd.f32 %v1465_v38, %v442_v39 }
 0x11b   : > { %v921_v43 = vpop.f32.mrf.mxu0  ;;  %v945_v44 = vpop.f32.mrf.mxu1 }
 0x11c   : > { %633 = vxpose.xlu1.b32.start [1/16] (narrow) %v523_v41, 40  ;;  %601 = vxpose.xlu0.b32.start [1/16] (narrow) %v443_v42, 40  ;;  %v458_v53 = vadd.f32 %v921_v43, %v1465_v38  ;;  %v538_v54 = vadd.f32 %v945_v44, %v1465_v38 }
 0x11d   : > { %v452_v47 = vpop.f32.mrf.mxu0  ;;  %v532_v48 = vpop.f32.mrf.mxu1 }
 0x11e   : > { %v453_v49 = vadd.f32 %v1465_v38, %v452_v47  ;;  %v533_v50 = vadd.f32 %v1465_v38, %v532_v48 }
 0x11f   : > { %v924_v51 = vpop.f32.mrf.mxu0  ;;  %v948_v52 = vpop.f32.mrf.mxu1 }
 0x120   : > { %634 = vxpose.xlu1.b32.cont [2/16] (narrow) %v528_v46, 40  ;;  %602 = vxpose.xlu0.b32.cont [2/16] (narrow) %v448_v45, 40  ;;  %v468_v61 = vadd.f32 %v924_v51, %v1465_v38  ;;  %v548_v62 = vadd.f32 %v948_v52, %v1465_v38 }
 0x121   : > { %v462_v55 = vpop.f32.mrf.mxu0  ;;  %v542_v56 = vpop.f32.mrf.mxu1 }
 0x122   : > { %v463_v57 = vadd.f32 %v1465_v38, %v462_v55  ;;  %v543_v58 = vadd.f32 %v1465_v38, %v542_v56 }
 0x123   : > { %v927_v59 = vpop.f32.mrf.mxu0  ;;  %v951_v60 = vpop.f32.mrf.mxu1 }
 0x124   : > { %635 = vxpose.xlu1.b32.cont [3/16] (narrow) %v533_v50, 40  ;;  %603 = vxpose.xlu0.b32.cont [3/16] (narrow) %v453_v49, 40  ;;  %v478_v5 = vadd.f32 %v927_v59, %v1465_v38  ;;  %v558_v6 = vadd.f32 %v951_v60, %v1465_v38 }
 0x125   : > { %v472_v63 = vpop.f32.mrf.mxu0  ;;  %v552_v0 = vpop.f32.mrf.mxu1 }
 0x126   : > { %v473_v1 = vadd.f32 %v1465_v38, %v472_v63  ;;  %v553_v2 = vadd.f32 %v1465_v38, %v552_v0 }
 0x127   : > { %v930_v3 = vpop.f32.mrf.mxu0  ;;  %v954_v4 = vpop.f32.mrf.mxu1 }
 0x128   : > { %636 = vxpose.xlu1.b32.cont [4/16] (narrow) %v538_v54, 40  ;;  %604 = vxpose.xlu0.b32.cont [4/16] (narrow) %v458_v53, 40  ;;  %v488_v13 = vadd.f32 %v930_v3, %v1465_v38  ;;  %v568_v14 = vadd.f32 %v954_v4, %v1465_v38 }
 0x129   : > { %v482_v7 = vpop.f32.mrf.mxu0  ;;  %v562_v8 = vpop.f32.mrf.mxu1 }
 0x12a   : > { %v483_v9 = vadd.f32 %v1465_v38, %v482_v7  ;;  %v563_v10 = vadd.f32 %v1465_v38, %v562_v8 }
 0x12b   : > { %v933_v11 = vpop.f32.mrf.mxu0  ;;  %v957_v12 = vpop.f32.mrf.mxu1 }
 0x12c   : > { %637 = vxpose.xlu1.b32.cont [5/16] (narrow) %v543_v58, 40  ;;  %605 = vxpose.xlu0.b32.cont [5/16] (narrow) %v463_v57, 40  ;;  %v498_v21 = vadd.f32 %v933_v11, %v1465_v38  ;;  %v578_v22 = vadd.f32 %v957_v12, %v1465_v38 }
 0x12d   : > { %v492_v15 = vpop.f32.mrf.mxu0  ;;  %v572_v16 = vpop.f32.mrf.mxu1 }
 0x12e   : > { %v493_v17 = vadd.f32 %v1465_v38, %v492_v15  ;;  %v573_v18 = vadd.f32 %v1465_v38, %v572_v16 }
 0x12f   : > { %v936_v19 = vpop.f32.mrf.mxu0  ;;  %v960_v20 = vpop.f32.mrf.mxu1 }
 0x130   : > { %638 = vxpose.xlu1.b32.cont [6/16] (narrow) %v548_v62, 40  ;;  %606 = vxpose.xlu0.b32.cont [6/16] (narrow) %v468_v61, 40  ;;  %v508_v29 = vadd.f32 %v936_v19, %v1465_v38  ;;  %v588_v30 = vadd.f32 %v960_v20, %v1465_v38 }
 0x131   : > { %v502_v23 = vpop.f32.mrf.mxu0  ;;  %v582_v24 = vpop.f32.mrf.mxu1 }
 0x132   : > { %v503_v25 = vadd.f32 %v1465_v38, %v502_v23  ;;  %v583_v26 = vadd.f32 %v1465_v38, %v582_v24 }
 0x133   : > { %v939_v27 = vpop.f32.mrf.mxu0  ;;  %v963_v28 = vpop.f32.mrf.mxu1 }
 0x134   : > { %639 = vxpose.xlu1.b32.cont [7/16] (narrow) %v553_v2, 40  ;;  %607 = vxpose.xlu0.b32.cont [7/16] (narrow) %v473_v1, 40  ;;  %v518_v35 = vadd.f32 %v939_v27, %v1465_v38  ;;  %v598_v36 = vadd.f32 %v963_v28, %v1465_v38 }
 0x135   : > { %v512_v31 = vpop.f32.mrf.mxu0  ;;  %v592_v32 = vpop.f32.mrf.mxu1 }
 0x136   : > { %v513_v33 = vadd.f32 %v1465_v38, %v512_v31  ;;  %v593_v34 = vadd.f32 %v1465_v38, %v592_v32 }
 0x138   : > { %640 = vxpose.xlu1.b32.cont [8/16] (narrow) %v558_v6, 40  ;;  %608 = vxpose.xlu0.b32.cont [8/16] (narrow) %v478_v5, 40 }
 0x13c   : > { %641 = vxpose.xlu1.b32.cont [9/16] (narrow) %v563_v10, 40  ;;  %609 = vxpose.xlu0.b32.cont [9/16] (narrow) %v483_v9, 40 }
 0x140   : > { %642 = vxpose.xlu1.b32.cont [10/16] (narrow) %v568_v14, 40  ;;  %610 = vxpose.xlu0.b32.cont [10/16] (narrow) %v488_v13, 40 }
 0x144   : > { %643 = vxpose.xlu1.b32.cont [11/16] (narrow) %v573_v18, 40  ;;  %611 = vxpose.xlu0.b32.cont [11/16] (narrow) %v493_v17, 40 }
 0x148   : > { %644 = vxpose.xlu1.b32.cont [12/16] (narrow) %v578_v22, 40  ;;  %612 = vxpose.xlu0.b32.cont [12/16] (narrow) %v498_v21, 40 }
 0x14c   : > { %645 = vxpose.xlu1.b32.cont [13/16] (narrow) %v583_v26, 40  ;;  %613 = vxpose.xlu0.b32.cont [13/16] (narrow) %v503_v25, 40 }
 0x150   : > { %646 = vxpose.xlu1.b32.cont [14/16] (narrow) %v588_v30, 40  ;;  %614 = vxpose.xlu0.b32.cont [14/16] (narrow) %v508_v29, 40 }
 0x154   : > { %647 = vxpose.xlu1.b32.cont [15/16] (narrow) %v593_v34, 40  ;;  %615 = vxpose.xlu0.b32.cont [15/16] (narrow) %v513_v33, 40 }
 0x158   : > { %648 = vxpose.xlu1.b32.end [16/16] (narrow) %v598_v36, 40  ;;  %616 = vxpose.xlu0.b32.end [16/16] (narrow) %v518_v35, 40 }
 0x198   : > { %v649_v37 = vpop.trf.xlu1  ;;  %v617_v39 = vpop.trf.xlu0 }
 0x199   : > { %666 = vst [vmem:[%s1500_s21 + $0x8] sm:$0xff] %v649_v37  ;;  %665 = vst [vmem:[%s1500_s21] sm:$0xff] %v617_v39 }
 0x19c   : > { %v650_v38 = vpop.trf.xlu1  ;;  %v618_v40 = vpop.trf.xlu0 }
 0x19d   : > { %668 = vst [vmem:[%s1500_s21 + $0x18] sm:$0xff] %v650_v38  ;;  %667 = vst [vmem:[%s1500_s21 + $0x10] sm:$0xff] %v618_v40 }
 0x1a0   : > { %v651_v41 = vpop.trf.xlu1  ;;  %v619_v42 = vpop.trf.xlu0  ;;  %v699_v47 = vld [vmem:[%s1500_s21] sm:$0xff] (%p1347_p11)  ;;  %v701_v48 = vld [vmem:[%s1500_s21 + $0x8] sm:$0xff] (%p1347_p11) }
 0x1a1   : > { %670 = vst [vmem:[%s1500_s21 + $0x28] sm:$0xff] %v651_v41  ;;  %669 = vst [vmem:[%s1500_s21 + $0x20] sm:$0xff] %v619_v42 }
 0x1a2   : > { %700 = vst [vmem:[%s686_s26] sm:$0xff] (%p1347_p11), %v699_v47  ;;  %702 = vst [vmem:[%s686_s26 + $0x8] sm:$0xff] (%p1347_p11), %v701_v48 }
 0x1a4   : > { %v652_v43 = vpop.trf.xlu1  ;;  %v620_v44 = vpop.trf.xlu0  ;;  %v703_v49 = vld [vmem:[%s1500_s21 + $0x10] sm:$0xff] (%p1347_p11)  ;;  %v705_v50 = vld [vmem:[%s1500_s21 + $0x18] sm:$0xff] (%p1347_p11) }
 0x1a5   : > { %672 = vst [vmem:[%s1500_s21 + $0x38] sm:$0xff] %v652_v43  ;;  %671 = vst [vmem:[%s1500_s21 + $0x30] sm:$0xff] %v620_v44  ;;  %681 = sbr.rel (!%p1347_p11) target bundleno = 434 (0x1b2), region = 48 }
 0x1a6   : > { %704 = vst [vmem:[%s686_s26 + $0x20] sm:$0xff] (%p1347_p11), %v703_v49  ;;  %706 = vst [vmem:[%s686_s26 + $0x28] sm:$0xff] (%p1347_p11), %v705_v50 }
 0x1a8   : > { %v653_v45 = vpop.trf.xlu1  ;;  %v621_v46 = vpop.trf.xlu0  ;;  %v707_v51 = vld [vmem:[%s1500_s21 + $0x20] sm:$0xff] (%p1347_p11)  ;;  %v709_v52 = vld [vmem:[%s1500_s21 + $0x28] sm:$0xff] (%p1347_p11) }
 0x1a9   : > { %674 = vst [vmem:[%s1500_s21 + $0x48] sm:$0xf] %v653_v45  ;;  %673 = vst [vmem:[%s1500_s21 + $0x40] sm:$0xf] %v621_v46 }
 0x1aa   : > { %708 = vst [vmem:[%s686_s26 + $0x40] sm:$0xff] %v707_v51  ;;  %710 = vst [vmem:[%s686_s26 + $0x48] sm:$0xff] %v709_v52 }
 0x1ac   : > { %v711_v53 = vld [vmem:[%s1500_s21 + $0x30] sm:$0xff]  ;;  %v713_v54 = vld [vmem:[%s1500_s21 + $0x38] sm:$0xff] }
 0x1ad   : > { %712 = vst [vmem:[%s686_s26 + $0x60] sm:$0xff] %v711_v53  ;;  %714 = vst [vmem:[%s686_s26 + $0x68] sm:$0xff] %v713_v54 }
 0x1b0   : > { %v715_v55 = vld [vmem:[%s1500_s21 + $0x40] sm:$0xff]  ;;  %v717_v56 = vld [vmem:[%s1500_s21 + $0x48] sm:$0xff] }
 0x1b1   : > { %716 = vst [vmem:[%s686_s26 + $0x80] sm:$0xff] %v715_v55  ;;  %718 = vst [vmem:[%s686_s26 + $0x88] sm:$0xff] %v717_v56 }
 0x1b2 PF: > { %s17_s19 = sadd.s32 1, %s1218_s19   ;;  %s1575_s6 = sld [smem:[#allocation10_spill]] }
 0x1b3   : > { %p14_p1 = scmp.ge.s32.totalorder %s17_s19, 6   ;;  %s1576_s12 = smov %s1194_s13 }
 0x1b4   : > { %s1577_s13 = smov %s1198_s14  ;;  %s1578_s14 = smov %s1364_s11 }
 0x1b5   : > { %s1579_s15 = smov %s1210_s17  ;;  %s1580_s16 = smov %s1214_s18 }
 0x1b6   : > { %s1582_s18 = smov %s1588_s20  ;;  %16 = sbr.rel (!%p14_p1) target bundleno = 9 (0x9), region = 103 }
 0x1b8   : > { %s1581_s17 = smov %s1575_s6 }
 0x1bb   :  { %734 = vsyncpa [#allocation3], 1 }
 0x1bc   :  { %736 = vsyncpa [#allocation3 + $0x1], 1 }
 0x1bd   :  { %737 = vsyncpa [#allocation5], 1 }

</bundles_post_ra>
